<compile_context>
chip_gen: v7x
topology: tpu7x:2x2x1
jax: 0.10.0
libtpu: 0.0.40
codegen_flags: <defaults>
</compile_context>

<pallas_src>
import functools

import jax
import jax.numpy as jnp
from jax.experimental import pallas as pl
from jax.experimental.pallas import tpu as pltpu


def _sgb_kernel(x_ref,
                n1w_ref, n1b_ref,
                w1u_ref, c1u_ref, w1v_ref, c1v_ref,
                n2w_ref, n2b_ref, wp_ref, bp_ref,
                w2_ref, c2_ref,
                out_ref,
                *, bt, n, bf16_elementwise):
    d = x_ref.shape[-1]
    g = w1u_ref.shape[-1]
    m = bt * n
    f32 = jnp.float32
    bf16 = jnp.bfloat16

    # Flatten the folded batch slab so the MXU sees M = bt*n rows.
    x = x_ref[...].reshape(m, d)                         # (M, D) f32 (residual source)

    # --- block LayerNorm (eps = 1e-6) over D; fused single-pass statistics ---
    mu = jnp.mean(x, axis=-1, keepdims=True)
    ex2 = jnp.mean(x * x, axis=-1, keepdims=True)
    var = jnp.maximum(ex2 - mu * mu, 0.0)
    y = (x - mu) * jax.lax.rsqrt(var + 1e-6)
    y = y * n1w_ref[...] + n1b_ref[...]                  # (1, D) broadcast
    y_bf = y.astype(bf16)                                # MXU operand

    # --- v path first: fc1(v-half) -> GELU -> SGU LayerNorm -> spatial proj ---
    v = jnp.dot(y_bf, w1v_ref[...], preferred_element_type=f32) + c1v_ref[...]
    v = jax.nn.gelu(v, approximate=True)                 # f32: feeds LN statistics

    mu2 = jnp.mean(v, axis=-1, keepdims=True)
    ev2 = jnp.mean(v * v, axis=-1, keepdims=True)
    var2 = jnp.maximum(ev2 - mu2 * mu2, 0.0)
    v = (v - mu2) * jax.lax.rsqrt(var2 + 1e-5)
    v = v * n2w_ref[...] + n2b_ref[...]                  # (1, G) broadcast

    # Spatial mixing acts within each batch: v[b] <- Wp @ v[b] + bp.
    wp = wp_ref[...]                                     # (N, N) bf16
    bp = bp_ref[...]                                     # (N, 1) f32
    v_b = v.astype(bf16).reshape(bt, n, g)
    mixed = [jnp.dot(wp, v_b[b], preferred_element_type=f32) + bp
             for b in range(bt)]                         # bt x (N, G), unrolled (bt static)
    v = mixed[0] if bt == 1 else jnp.concatenate(mixed, axis=0)   # (M, G)

    # --- u path: fc1(u-half) -> GELU, then gate ---
    u = jnp.dot(y_bf, w1u_ref[...], preferred_element_type=f32) + c1u_ref[...]
    if bf16_elementwise:
        # v6e/v7x: bf16 VPU/EUP runs GELU + gating at ~2x the f32 rate, and u
        # only feeds a bf16 MXU operand anyway.
        gated = jax.nn.gelu(u.astype(bf16), approximate=True) * v.astype(bf16)
    else:
        # v5e and older: no bf16 elementwise path — keep f32 and cast once.
        gated = (jax.nn.gelu(u, approximate=True) * v).astype(bf16)

    # --- fc2 + residual ---
    o = jnp.dot(gated, w2_ref[...], preferred_element_type=f32) + c2_ref[...]
    out_ref[...] = (x + o).reshape(bt, n, d)


_PARAM_ORDER = ("n1w", "n1b", "w1u", "c1u", "w1v", "c1v",
                "n2w", "n2b", "wp", "bp", "w2", "c2")


def _round_up(a, b):
    return -(-a // b) * b


def _pick_batch_tile(B, N, rows_target, two_cores):
    """Largest divisor of B whose folded M = bt*N is near rows_target; shrunk
    (when possible) so 2-TensorCore chips get >= 2 parallel grid steps."""
    want = max(1, -(-rows_target // N))                         # ceil(rows_target / N)
    bt = max(d for d in range(1, B + 1) if B % d == 0 and d <= want)
    if two_cores and B // bt < 2:
        smaller = [d for d in range(1, B // 2 + 1) if B % d == 0]
        if smaller:
            bt = max(smaller)
    return bt


def _vmem_limit_bytes():
    cap = None
    try:
        cap = int(pltpu.get_tpu_info().vmem_capacity_bytes)
    except Exception:  # capacity query only; the conservative default below is safe everywhere
        pass
    if not cap:
        cap = 64 * 1024 * 1024          # assume the smallest generation (v7x physical VMEM)
    # ~55% of physical: ~35 MiB on v7x, ~70 MiB on v5e/v6e — headroom for the
    # compiler-materialized (M, C) f32 intermediates and double-buffered x/out slabs.
    return int(cap * 0.55)


def _spatial_gating_block(x, params):
    B, N, D = x.shape
    G = params["w1u"].shape[1]
    C = 2 * G

    kind = jax.devices()[0].device_kind.lower()
    # <= v5 generations: 128-wide MXU, no bf16 VPU/EUP path.
    old_gen = any(s in kind for s in ("v2", "v3", "v4", "v5"))
    bf16_elementwise = not old_gen
    # v5e / v6e expose a single TensorCore per device; v4 / v5p / v7x expose two.
    single_core = any(s in kind for s in ("v5e", "v5 lite", "v6e", "v6 lite"))
    rows_target = 128 if old_gen else 256
    bt = _pick_batch_tile(B, N, rows_target, two_cores=not single_core)
    num_tiles = B // bt

    kernel = functools.partial(_sgb_kernel, bt=bt, n=N,
                               bf16_elementwise=bf16_elementwise)

    param_arrays = [params[k] for k in _PARAM_ORDER]

    def const_spec(p):
        # Constant-index blocks: Pallas skips re-DMA when the block index does
        # not change between grid steps; these are small next to the folded
        # activation slabs, so default buffering is kept.
        nd = p.ndim
        return pl.BlockSpec(p.shape, lambda i: (0,) * nd)

    # Advisory cost estimate (three matmuls + tanh-GELU transcendentals).
    flops = 2 * B * N * (D * C + N * G + G * D)
    transcendentals = B * N * C
    bytes_accessed = 2 * x.size * x.dtype.itemsize + sum(
        int(p.size) * p.dtype.itemsize for p in param_arrays)

    return pl.pallas_call(
        kernel,
        out_shape=jax.ShapeDtypeStruct((B, N, D), x.dtype),
        grid_spec=pltpu.PrefetchScalarGridSpec(
            num_scalar_prefetch=0,
            grid=(num_tiles,),
            in_specs=[pl.BlockSpec((bt, N, D), lambda i: (i, 0, 0))]   # x (folded batches)
                     + [const_spec(p) for p in param_arrays],
            out_specs=pl.BlockSpec((bt, N, D), lambda i: (i, 0, 0)),
        ),
        compiler_params=pltpu.CompilerParams(
            dimension_semantics=("parallel",),
            vmem_limit_bytes=_vmem_limit_bytes(),
        ),
        cost_estimate=pl.CostEstimate(
            flops=int(flops),
            transcendentals=int(transcendentals),
            bytes_accessed=int(bytes_accessed),
        ),
    )(x, *param_arrays)


def spatial_gating_block(x, params, *, seq_pad_multiple=8):
    """x: (B, N, D) float32. params: dict of weights (see init_params).

    seq_pad_multiple: one-time host-side zero-padding of the sequence axis (and
    of Wp / bp rows+cols).  8 keeps sublane alignment; use 128 (256 on v6e/v7x)
    for production seq lengths like 196 so the spatial matmul stays MXU-aligned.
    Zero-padded rows cannot contaminate valid rows (Wp's padded columns are 0)
    and are sliced off before returning.
    """
    B, N, D = x.shape
    Np = _round_up(N, seq_pad_multiple)
    if Np != N:
        pad = Np - N
        x = jnp.pad(x, ((0, 0), (0, pad), (0, 0)))
        params = dict(params)
        params["wp"] = jnp.pad(params["wp"], ((0, pad), (0, pad)))
        params["bp"] = jnp.pad(params["bp"], ((0, pad), (0, 0)))
    out = _spatial_gating_block(x, params)
    return out[:, :N, :] if Np != N else out


def init_params(key, dim, seq_len, mlp_ratio=4):
    C = int(dim * mlp_ratio)
    G = C // 2
    ks = jax.random.split(key, 8)
    f32, bf16 = jnp.float32, jnp.bfloat16

    # fc1: dim -> C (stored transposed, split into u/v halves, bf16 for the MXU)
    w1 = (0.02 * jax.random.normal(ks[2], (dim, C))).astype(f32)
    c1 = (0.02 * jax.random.normal(ks[3], (1, C))).astype(f32)

    params = {
        # block LayerNorm (eps 1e-6)
        "n1w": (1.0 + 0.1 * jax.random.normal(ks[0], (1, dim))).astype(f32),
        "n1b": (0.1 * jax.random.normal(ks[1], (1, dim))).astype(f32),
        # fc1 halves
        "w1u": w1[:, :G].astype(bf16),
        "w1v": w1[:, G:].astype(bf16),
        "c1u": c1[:, :G],
        "c1v": c1[:, G:],
        # SGU LayerNorm over G (eps 1e-5)
        "n2w": (1.0 + 0.1 * jax.random.normal(ks[4], (1, G))).astype(f32),
        "n2b": (0.1 * jax.random.normal(ks[5], (1, G))).astype(f32),
        # SGU spatial proj over seq_len (init_weights: std=1e-6 weight, ones bias)
        "wp": (1e-6 * jax.random.normal(ks[6], (seq_len, seq_len))).astype(bf16),
        "bp": jnp.ones((seq_len, 1), f32),
        # fc2: G -> dim
        "w2": (0.02 * jax.random.normal(ks[7], (G, dim))).astype(bf16),
        "c2": jnp.zeros((1, dim), f32),
    }
    return params


def reference(x, p):
    """Pure-JAX f32 reference mirroring the PyTorch forward (exact-erf GELU)."""
    f32 = jnp.float32

    def ln(z, w, b, eps):
        mu = jnp.mean(z, axis=-1, keepdims=True)
        var = jnp.mean((z - mu) ** 2, axis=-1, keepdims=True)
        return (z - mu) * jax.lax.rsqrt(var + eps) * w + b

    y = ln(x, p["n1w"][0], p["n1b"][0], 1e-6)
    w1 = jnp.concatenate([p["w1u"], p["w1v"]], axis=1).astype(f32)
    c1 = jnp.concatenate([p["c1u"], p["c1v"]], axis=1)[0]
    h = y @ w1 + c1
    h = jax.nn.gelu(h, approximate=False)
    G = h.shape[-1] // 2
    u, v = h[..., :G], h[..., G:]
    v = ln(v, p["n2w"][0], p["n2b"][0], 1e-5)
    v = jnp.einsum("mn,bng->bmg", p["wp"].astype(f32), v) + p["bp"][None, :, :]
    o = (u * v) @ p["w2"].astype(f32) + p["c2"][0]
    return x + o


if __name__ == "__main__":
    B, N, D = 2, 16, 128          # batch, seq_len, dim (lane-dense: D, G multiples of 128)
    key = jax.random.PRNGKey(0)
    kx, kp = jax.random.split(key)
    x = jax.random.normal(kx, (B, N, D), dtype=jnp.float32)
    params = init_params(kp, dim=D, seq_len=N, mlp_ratio=4)

    out = spatial_gating_block(x, params)
    out = jax.block_until_ready(out)

    ref = reference(x, params)
    assert out.shape == (B, N, D)
    # Tolerance accounts for bf16 MXU operands (+ bf16 gating on v6e/v7x) and
    # tanh-GELU vs the f32/erf reference.
    assert jnp.allclose(out, ref, atol=1e-2, rtol=1e-2), "mismatch vs reference"
    print("KERNEL_OK")
</pallas_src>

<mosaic_0001>
module attributes {stable_mosaic.version = 11 : i64} {
  func.func @_sgb_kernel(%arg0: i32, %arg1: memref<1x16x128xf32, #tpu.memory_space<vmem>>, %arg2: memref<1x128xf32, #tpu.memory_space<vmem>>, %arg3: memref<1x128xf32, #tpu.memory_space<vmem>>, %arg4: memref<128x256xbf16, #tpu.memory_space<vmem>>, %arg5: memref<1x256xf32, #tpu.memory_space<vmem>>, %arg6: memref<128x256xbf16, #tpu.memory_space<vmem>>, %arg7: memref<1x256xf32, #tpu.memory_space<vmem>>, %arg8: memref<1x256xf32, #tpu.memory_space<vmem>>, %arg9: memref<1x256xf32, #tpu.memory_space<vmem>>, %arg10: memref<16x16xbf16, #tpu.memory_space<vmem>>, %arg11: memref<16x1xf32, #tpu.memory_space<vmem>>, %arg12: memref<256x128xbf16, #tpu.memory_space<vmem>>, %arg13: memref<1x128xf32, #tpu.memory_space<vmem>>, %arg14: memref<1x16x128xf32, #tpu.memory_space<vmem>>) attributes {dimension_semantics = [#tpu.dimension_semantics<parallel>], iteration_bounds = array<i64: 2>, scalar_prefetch = 0 : i64, scratch_operands = 0 : i64, tpu.core_type = #tpu.core_type<tc>, window_params = [{transform_indices = @transform_0, window_bounds = array<i64: 1, 16, 128>}, {pipeline_mode = #tpu.pipeline_mode<synchronous>, transform_indices = @transform_1, window_bounds = array<i64: 1, 128>}, {pipeline_mode = #tpu.pipeline_mode<synchronous>, transform_indices = @transform_2, window_bounds = array<i64: 1, 128>}, {pipeline_mode = #tpu.pipeline_mode<synchronous>, transform_indices = @transform_3, window_bounds = array<i64: 128, 256>}, {pipeline_mode = #tpu.pipeline_mode<synchronous>, transform_indices = @transform_4, window_bounds = array<i64: 1, 256>}, {pipeline_mode = #tpu.pipeline_mode<synchronous>, transform_indices = @transform_5, window_bounds = array<i64: 128, 256>}, {pipeline_mode = #tpu.pipeline_mode<synchronous>, transform_indices = @transform_6, window_bounds = array<i64: 1, 256>}, {pipeline_mode = #tpu.pipeline_mode<synchronous>, transform_indices = @transform_7, window_bounds = array<i64: 1, 256>}, {pipeline_mode = #tpu.pipeline_mode<synchronous>, transform_indices = @transform_8, window_bounds = array<i64: 1, 256>}, {pipeline_mode = #tpu.pipeline_mode<synchronous>, transform_indices = @transform_9, window_bounds = array<i64: 16, 16>}, {pipeline_mode = #tpu.pipeline_mode<synchronous>, transform_indices = @transform_10, window_bounds = array<i64: 16, 1>}, {pipeline_mode = #tpu.pipeline_mode<synchronous>, transform_indices = @transform_11, window_bounds = array<i64: 256, 128>}, {pipeline_mode = #tpu.pipeline_mode<synchronous>, transform_indices = @transform_12, window_bounds = array<i64: 1, 128>}, {transform_indices = @transform_13, window_bounds = array<i64: 1, 16, 128>}]} {
    %c0 = arith.constant 0 : index
    %c0_0 = arith.constant 0 : index
    %c0_1 = arith.constant 0 : index
    %0 = vector.load %arg1[%c0, %c0_0, %c0_1] : memref<1x16x128xf32, #tpu.memory_space<vmem>>, vector<1x16x128xf32>
    %1 = vector.shape_cast %0 : vector<1x16x128xf32> to vector<16x128xf32>
    %cst = arith.constant dense<0.000000e+00> : vector<16xf32>
    %2 = vector.multi_reduction <add>, %1, %cst [1] : vector<16x128xf32> to vector<16xf32>
    %3 = vector.shape_cast %2 : vector<16xf32> to vector<16x1xf32>
    %cst_2 = arith.constant 1.280000e+02 : f32
    %4 = vector.broadcast %cst_2 : f32 to vector<16x1xf32>
    %5 = arith.divf %3, %4 : vector<16x1xf32>
    %6 = arith.mulf %1, %1 : vector<16x128xf32>
    %cst_3 = arith.constant dense<0.000000e+00> : vector<16xf32>
    %7 = vector.multi_reduction <add>, %6, %cst_3 [1] : vector<16x128xf32> to vector<16xf32>
    %8 = vector.shape_cast %7 : vector<16xf32> to vector<16x1xf32>
    %cst_4 = arith.constant 1.280000e+02 : f32
    %9 = vector.broadcast %cst_4 : f32 to vector<16x1xf32>
    %10 = arith.divf %8, %9 : vector<16x1xf32>
    %11 = arith.mulf %5, %5 : vector<16x1xf32>
    %12 = arith.subf %10, %11 : vector<16x1xf32>
    %cst_5 = arith.constant 0.000000e+00 : f32
    %13 = vector.broadcast %cst_5 : f32 to vector<16x1xf32>
    %14 = arith.maximumf %12, %13 : vector<16x1xf32>
    %15 = vector.broadcast %5 : vector<16x1xf32> to vector<16x128xf32>
    %16 = arith.subf %1, %15 : vector<16x128xf32>
    %cst_6 = arith.constant 9.99999997E-7 : f32
    %17 = vector.broadcast %cst_6 : f32 to vector<16x1xf32>
    %18 = arith.addf %14, %17 : vector<16x1xf32>
    %19 = math.rsqrt %18 : vector<16x1xf32>
    %20 = vector.broadcast %19 : vector<16x1xf32> to vector<16x128xf32>
    %21 = arith.mulf %16, %20 : vector<16x128xf32>
    %c0_7 = arith.constant 0 : index
    %c0_8 = arith.constant 0 : index
    %22 = vector.load %arg2[%c0_7, %c0_8] : memref<1x128xf32, #tpu.memory_space<vmem>>, vector<1x128xf32>
    %23 = vector.broadcast %22 : vector<1x128xf32> to vector<16x128xf32>
    %24 = arith.mulf %21, %23 : vector<16x128xf32>
    %c0_9 = arith.constant 0 : index
    %c0_10 = arith.constant 0 : index
    %25 = vector.load %arg3[%c0_9, %c0_10] : memref<1x128xf32, #tpu.memory_space<vmem>>, vector<1x128xf32>
    %26 = vector.broadcast %25 : vector<1x128xf32> to vector<16x128xf32>
    %27 = arith.addf %24, %26 : vector<16x128xf32>
    %28 = arith.truncf %27 : vector<16x128xf32> to vector<16x128xbf16>
    %c0_11 = arith.constant 0 : index
    %c0_12 = arith.constant 0 : index
    %29 = vector.load %arg6[%c0_11, %c0_12] : memref<128x256xbf16, #tpu.memory_space<vmem>>, vector<128x256xbf16>
    %cst_13 = arith.constant dense<0.000000e+00> : vector<16x256xf32>
    %30 = tpu.matmul %28, %29, %cst_13 {dimension_numbers = #tpu.dot_dimension_numbers<[1], [0], [0], [1], [0, 0, 1, 1], [], []>} : vector<16x128xbf16>, vector<128x256xbf16>, vector<16x256xf32> -> vector<16x256xf32>
    %c0_14 = arith.constant 0 : index
    %c0_15 = arith.constant 0 : index
    %31 = vector.load %arg7[%c0_14, %c0_15] : memref<1x256xf32, #tpu.memory_space<vmem>>, vector<1x256xf32>
    %32 = vector.broadcast %31 : vector<1x256xf32> to vector<16x256xf32>
    %33 = arith.addf %30, %32 : vector<16x256xf32>
    %34 = arith.mulf %33, %33 : vector<16x256xf32>
    %35 = arith.mulf %33, %34 : vector<16x256xf32>
    %cst_16 = arith.constant 4.471500e-02 : f32
    %36 = vector.broadcast %cst_16 : f32 to vector<16x256xf32>
    %37 = arith.mulf %36, %35 : vector<16x256xf32>
    %38 = arith.addf %33, %37 : vector<16x256xf32>
    %cst_17 = arith.constant 0.797884583 : f32
    %39 = vector.broadcast %cst_17 : f32 to vector<16x256xf32>
    %40 = arith.mulf %39, %38 : vector<16x256xf32>
    %41 = math.tanh %40 : vector<16x256xf32>
    %cst_18 = arith.constant 1.000000e+00 : f32
    %42 = vector.broadcast %cst_18 : f32 to vector<16x256xf32>
    %43 = arith.addf %42, %41 : vector<16x256xf32>
    %cst_19 = arith.constant 5.000000e-01 : f32
    %44 = vector.broadcast %cst_19 : f32 to vector<16x256xf32>
    %45 = arith.mulf %44, %43 : vector<16x256xf32>
    %46 = arith.mulf %33, %45 : vector<16x256xf32>
    %cst_20 = arith.constant dense<0.000000e+00> : vector<16xf32>
    %47 = vector.multi_reduction <add>, %46, %cst_20 [1] : vector<16x256xf32> to vector<16xf32>
    %48 = vector.shape_cast %47 : vector<16xf32> to vector<16x1xf32>
    %cst_21 = arith.constant 2.560000e+02 : f32
    %49 = vector.broadcast %cst_21 : f32 to vector<16x1xf32>
    %50 = arith.divf %48, %49 : vector<16x1xf32>
    %51 = arith.mulf %46, %46 : vector<16x256xf32>
    %cst_22 = arith.constant dense<0.000000e+00> : vector<16xf32>
    %52 = vector.multi_reduction <add>, %51, %cst_22 [1] : vector<16x256xf32> to vector<16xf32>
    %53 = vector.shape_cast %52 : vector<16xf32> to vector<16x1xf32>
    %cst_23 = arith.constant 2.560000e+02 : f32
    %54 = vector.broadcast %cst_23 : f32 to vector<16x1xf32>
    %55 = arith.divf %53, %54 : vector<16x1xf32>
    %56 = arith.mulf %50, %50 : vector<16x1xf32>
    %57 = arith.subf %55, %56 : vector<16x1xf32>
    %cst_24 = arith.constant 0.000000e+00 : f32
    %58 = vector.broadcast %cst_24 : f32 to vector<16x1xf32>
    %59 = arith.maximumf %57, %58 : vector<16x1xf32>
    %60 = vector.broadcast %50 : vector<16x1xf32> to vector<16x256xf32>
    %61 = arith.subf %46, %60 : vector<16x256xf32>
    %cst_25 = arith.constant 9.99999974E-6 : f32
    %62 = vector.broadcast %cst_25 : f32 to vector<16x1xf32>
    %63 = arith.addf %59, %62 : vector<16x1xf32>
    %64 = math.rsqrt %63 : vector<16x1xf32>
    %65 = vector.broadcast %64 : vector<16x1xf32> to vector<16x256xf32>
    %66 = arith.mulf %61, %65 : vector<16x256xf32>
    %c0_26 = arith.constant 0 : index
    %c0_27 = arith.constant 0 : index
    %67 = vector.load %arg8[%c0_26, %c0_27] : memref<1x256xf32, #tpu.memory_space<vmem>>, vector<1x256xf32>
    %68 = vector.broadcast %67 : vector<1x256xf32> to vector<16x256xf32>
    %69 = arith.mulf %66, %68 : vector<16x256xf32>
    %c0_28 = arith.constant 0 : index
    %c0_29 = arith.constant 0 : index
    %70 = vector.load %arg9[%c0_28, %c0_29] : memref<1x256xf32, #tpu.memory_space<vmem>>, vector<1x256xf32>
    %71 = vector.broadcast %70 : vector<1x256xf32> to vector<16x256xf32>
    %72 = arith.addf %69, %71 : vector<16x256xf32>
    %c0_30 = arith.constant 0 : index
    %c0_31 = arith.constant 0 : index
    %73 = vector.load %arg10[%c0_30, %c0_31] : memref<16x16xbf16, #tpu.memory_space<vmem>>, vector<16x16xbf16>
    %c0_32 = arith.constant 0 : index
    %c0_33 = arith.constant 0 : index
    %74 = vector.load %arg11[%c0_32, %c0_33] : memref<16x1xf32, #tpu.memory_space<vmem>>, vector<16x1xf32>
    %75 = arith.truncf %72 : vector<16x256xf32> to vector<16x256xbf16>
    %76 = vector.shape_cast %75 : vector<16x256xbf16> to vector<1x16x256xbf16>
    %77 = vector.shape_cast %76 : vector<1x16x256xbf16> to vector<16x256xbf16>
    %cst_34 = arith.constant dense<0.000000e+00> : vector<16x256xf32>
    %78 = tpu.matmul %73, %77, %cst_34 {dimension_numbers = #tpu.dot_dimension_numbers<[1], [0], [0], [1], [0, 0, 1, 1], [], []>} : vector<16x16xbf16>, vector<16x256xbf16>, vector<16x256xf32> -> vector<16x256xf32>
    %79 = vector.broadcast %74 : vector<16x1xf32> to vector<16x256xf32>
    %80 = arith.addf %78, %79 : vector<16x256xf32>
    %c0_35 = arith.constant 0 : index
    %c0_36 = arith.constant 0 : index
    %81 = vector.load %arg4[%c0_35, %c0_36] : memref<128x256xbf16, #tpu.memory_space<vmem>>, vector<128x256xbf16>
    %cst_37 = arith.constant dense<0.000000e+00> : vector<16x256xf32>
    %82 = tpu.matmul %28, %81, %cst_37 {dimension_numbers = #tpu.dot_dimension_numbers<[1], [0], [0], [1], [0, 0, 1, 1], [], []>} : vector<16x128xbf16>, vector<128x256xbf16>, vector<16x256xf32> -> vector<16x256xf32>
    %c0_38 = arith.constant 0 : index
    %c0_39 = arith.constant 0 : index
    %83 = vector.load %arg5[%c0_38, %c0_39] : memref<1x256xf32, #tpu.memory_space<vmem>>, vector<1x256xf32>
    %84 = vector.broadcast %83 : vector<1x256xf32> to vector<16x256xf32>
    %85 = arith.addf %82, %84 : vector<16x256xf32>
    %86 = arith.truncf %85 : vector<16x256xf32> to vector<16x256xbf16>
    %87 = arith.mulf %86, %86 : vector<16x256xbf16>
    %88 = arith.mulf %86, %87 : vector<16x256xbf16>
    %cst_40 = arith.constant 4.467770e-02 : bf16
    %89 = vector.broadcast %cst_40 : bf16 to vector<16x256xbf16>
    %90 = arith.mulf %89, %88 : vector<16x256xbf16>
    %91 = arith.addf %86, %90 : vector<16x256xbf16>
    %cst_41 = arith.constant 7.968750e-01 : bf16
    %92 = vector.broadcast %cst_41 : bf16 to vector<16x256xbf16>
    %93 = arith.mulf %92, %91 : vector<16x256xbf16>
    %94 = math.tanh %93 : vector<16x256xbf16>
    %cst_42 = arith.constant 1.000000e+00 : bf16
    %95 = vector.broadcast %cst_42 : bf16 to vector<16x256xbf16>
    %96 = arith.addf %95, %94 : vector<16x256xbf16>
    %cst_43 = arith.constant 5.000000e-01 : bf16
    %97 = vector.broadcast %cst_43 : bf16 to vector<16x256xbf16>
    %98 = arith.mulf %97, %96 : vector<16x256xbf16>
    %99 = arith.mulf %86, %98 : vector<16x256xbf16>
    %100 = arith.truncf %80 : vector<16x256xf32> to vector<16x256xbf16>
    %101 = arith.mulf %99, %100 : vector<16x256xbf16>
    %c0_44 = arith.constant 0 : index
    %c0_45 = arith.constant 0 : index
    %102 = vector.load %arg12[%c0_44, %c0_45] : memref<256x128xbf16, #tpu.memory_space<vmem>>, vector<256x128xbf16>
    %cst_46 = arith.constant dense<0.000000e+00> : vector<16x128xf32>
    %103 = tpu.matmul %101, %102, %cst_46 {dimension_numbers = #tpu.dot_dimension_numbers<[1], [0], [0], [1], [0, 0, 1, 1], [], []>} : vector<16x256xbf16>, vector<256x128xbf16>, vector<16x128xf32> -> vector<16x128xf32>
    %c0_47 = arith.constant 0 : index
    %c0_48 = arith.constant 0 : index
    %104 = vector.load %arg13[%c0_47, %c0_48] : memref<1x128xf32, #tpu.memory_space<vmem>>, vector<1x128xf32>
    %105 = vector.broadcast %104 : vector<1x128xf32> to vector<16x128xf32>
    %106 = arith.addf %103, %105 : vector<16x128xf32>
    %107 = arith.addf %1, %106 : vector<16x128xf32>
    %108 = vector.shape_cast %107 : vector<16x128xf32> to vector<1x16x128xf32>
    %c0_49 = arith.constant 0 : index
    %c0_50 = arith.constant 0 : index
    %c0_51 = arith.constant 0 : index
    %109 = vector.load %arg14[%c0_49, %c0_50, %c0_51] : memref<1x16x128xf32, #tpu.memory_space<vmem>>, vector<1x16x128xf32>
    tpu.vector_store %arg14[%c0_49, %c0_50, %c0_51], %108 {strides = array<i32>} : memref<1x16x128xf32, #tpu.memory_space<vmem>>, vector<1x16x128xf32>,
    return
  }
  func.func @transform_0(%arg0: i32) -> (i32, i32, i32) {
    %c0_i32 = arith.constant 0 : i32
    %c0_i32_0 = arith.constant 0 : i32
    %c0_i32_1 = arith.constant 0 : i32
    return %arg0, %c0_i32, %c0_i32_0 : i32, i32, i32
  }
  func.func @transform_1(%arg0: i32) -> (i32, i32) {
    %c0_i32 = arith.constant 0 : i32
    %c0_i32_0 = arith.constant 0 : i32
    %c0_i32_1 = arith.constant 0 : i32
    return %c0_i32, %c0_i32_0 : i32, i32
  }
  func.func @transform_2(%arg0: i32) -> (i32, i32) {
    %c0_i32 = arith.constant 0 : i32
    %c0_i32_0 = arith.constant 0 : i32
    %c0_i32_1 = arith.constant 0 : i32
    return %c0_i32, %c0_i32_0 : i32, i32
  }
  func.func @transform_3(%arg0: i32) -> (i32, i32) {
    %c0_i32 = arith.constant 0 : i32
    %c0_i32_0 = arith.constant 0 : i32
    %c0_i32_1 = arith.constant 0 : i32
    return %c0_i32, %c0_i32_0 : i32, i32
  }
  func.func @transform_4(%arg0: i32) -> (i32, i32) {
    %c0_i32 = arith.constant 0 : i32
    %c0_i32_0 = arith.constant 0 : i32
    %c0_i32_1 = arith.constant 0 : i32
    return %c0_i32, %c0_i32_0 : i32, i32
  }
  func.func @transform_5(%arg0: i32) -> (i32, i32) {
    %c0_i32 = arith.constant 0 : i32
    %c0_i32_0 = arith.constant 0 : i32
    %c0_i32_1 = arith.constant 0 : i32
    return %c0_i32, %c0_i32_0 : i32, i32
  }
  func.func @transform_6(%arg0: i32) -> (i32, i32) {
    %c0_i32 = arith.constant 0 : i32
    %c0_i32_0 = arith.constant 0 : i32
    %c0_i32_1 = arith.constant 0 : i32
    return %c0_i32, %c0_i32_0 : i32, i32
  }
  func.func @transform_7(%arg0: i32) -> (i32, i32) {
    %c0_i32 = arith.constant 0 : i32
    %c0_i32_0 = arith.constant 0 : i32
    %c0_i32_1 = arith.constant 0 : i32
    return %c0_i32, %c0_i32_0 : i32, i32
  }
  func.func @transform_8(%arg0: i32) -> (i32, i32) {
    %c0_i32 = arith.constant 0 : i32
    %c0_i32_0 = arith.constant 0 : i32
    %c0_i32_1 = arith.constant 0 : i32
    return %c0_i32, %c0_i32_0 : i32, i32
  }
  func.func @transform_9(%arg0: i32) -> (i32, i32) {
    %c0_i32 = arith.constant 0 : i32
    %c0_i32_0 = arith.constant 0 : i32
    %c0_i32_1 = arith.constant 0 : i32
    return %c0_i32, %c0_i32_0 : i32, i32
  }
  func.func @transform_10(%arg0: i32) -> (i32, i32) {
    %c0_i32 = arith.constant 0 : i32
    %c0_i32_0 = arith.constant 0 : i32
    %c0_i32_1 = arith.constant 0 : i32
    return %c0_i32, %c0_i32_0 : i32, i32
  }
  func.func @transform_11(%arg0: i32) -> (i32, i32) {
    %c0_i32 = arith.constant 0 : i32
    %c0_i32_0 = arith.constant 0 : i32
    %c0_i32_1 = arith.constant 0 : i32
    return %c0_i32, %c0_i32_0 : i32, i32
  }
  func.func @transform_12(%arg0: i32) -> (i32, i32) {
    %c0_i32 = arith.constant 0 : i32
    %c0_i32_0 = arith.constant 0 : i32
    %c0_i32_1 = arith.constant 0 : i32
    return %c0_i32, %c0_i32_0 : i32, i32
  }
  func.func @transform_13(%arg0: i32) -> (i32, i32, i32) {
    %c0_i32 = arith.constant 0 : i32
    %c0_i32_0 = arith.constant 0 : i32
    %c0_i32_1 = arith.constant 0 : i32
    return %arg0, %c0_i32, %c0_i32_0 : i32, i32, i32
  }
}

</mosaic_0001>

<bundles_post_ra>
// kernel: tpu_custom_call.1
= control target key start
LH: loop header
LB: loop body
LE: loop exit
PB: predicated region body
PF: predicated region fallthrough
CT: control target
= control target key end

     0   :  { %s2232_s0 = inlined_call_operand.hbm [shape: f32[2,16,128], index: 0, kind: input, shape index: {}]   ;;  %s2233_s1 = inlined_call_operand.vmem [shape: f32[1,128], index: 1, kind: input, shape index: {}]   ;;  %s2234_s2 = inlined_call_operand.vmem [shape: f32[1,128], index: 2, kind: input, shape index: {}]   ;;  %s2235_s3 = inlined_call_operand.hbm [shape: bf16[128,256], index: 3, kind: input, shape index: {}]   ;;  %s2236_s4 = inlined_call_operand.vmem [shape: f32[1,256], index: 4, kind: input, shape index: {}]   ;;  %s2237_s5 = inlined_call_operand.hbm [shape: bf16[128,256], index: 5, kind: input, shape index: {}]   ;;  %s2238_s6 = inlined_call_operand.vmem [shape: f32[1,256], index: 6, kind: input, shape index: {}]   ;;  %s2239_s7 = inlined_call_operand.vmem [shape: f32[1,256], index: 7, kind: input, shape index: {}]   ;;  %s2240_s8 = inlined_call_operand.vmem [shape: f32[1,256], index: 8, kind: input, shape index: {}]   ;;  %s2241_s9 = inlined_call_operand.vmem [shape: bf16[16,16], index: 9, kind: input, shape index: {}]   ;;  %s2242_s10 = inlined_call_operand.vmem [shape: f32[16,1], index: 10, kind: input, shape index: {}]   ;;  %s2243_s11 = inlined_call_operand.hbm [shape: bf16[256,128], index: 11, kind: input, shape index: {}]   ;;  %s2244_s12 = inlined_call_operand.vmem [shape: f32[1,128], index: 12, kind: input, shape index: {}]   ;;  %s2245_s13 = inlined_call_operand.hbm [shape: f32[2,16,128], index: 13, kind: output, shape index: {}]  }
   0x1   :  { %2252 = sst [smem:[#allocation17_spill]] %s2236_s4 }
   0x2   :  { %2253 = sst [smem:[#allocation18_spill]] %s2240_s8 }
   0x3   :  { %2254 = sst [smem:[#allocation19_spill]] %s2241_s9 }
   0x4   :  { %2255 = sst [smem:[#allocation20_spill]] %s2244_s12 }
   0x5   :  { %2256 = sst [smem:[#allocation21_spill]] %s2245_s13 }
   0x6   :  { %18 = vsyncpa [#allocation3], 0 }
   0x7   :  { %20 = vsyncpa [#allocation3 + $0x1], 0 }
   0x8   :  { %21 = vsyncpa [#allocation6], 0 }
   0x9   :  { %22 = vsyncpa [#allocation9], 0 }
   0xa   :  { %23 = vsyncpa [#allocation4], 0 }
   0xb   :  { %25 = vsyncpa [#allocation4 + $0x1], 0  ;;  %s1895_s25 = smov 0   ;;  %s1897_s26 = smov 0  }
   0xc   :  { %s1899_s27 = smov 0   ;;  %s1901_s28 = smov 0  }
   0xd LB: > { %2257 = sst [smem:[#allocation15_spill]] %s1799_s25  ;;  %s1916_s29 = sadd.s32 4294967295, %s1811_s28   ;;  %s1811_s28 = sphi %s1901_s28, %s2285_s28   ;;  %s1807_s27 = sphi %s1899_s27, %s2284_s27   ;;  %s1803_s26 = sphi %s1897_s26, %s2283_s26   ;;  %s1799_s25 = sphi %s1895_s25, %s2282_s25  }
   0xe   : > { %s1355_s30 = sadd.s32 4294967294, %s1811_s28   ;;  %p51_p0 = scmp.ne.s32.totalorder %s1803_s26, %s1799_s25 }
   0xf   : > { %p2249_p1 = scmp.eq.s32.totalorder %s1916_s29, 0  ;;  %p333_p3 = scmp.eq.s32.totalorder %s1355_s30, 1 }
  0x10   : > { %p1356_p5 = scmp.ge.s32.totalorder %s1811_s28, 1  ;;  %p340_p7 = scmp.lt.s32.totalorder %s1811_s28, 3 }
  0x11   : > { %p1925_p4 = por %p2249_p1, %p51_p0  ;;  %p1930_p6 = por %p333_p3, %p51_p0 }
  0x12   : > { %p1935_p8 = pnand %p1356_p5, %p340_p7  ;;  %s1813_s17 = smov [#allocation5]  }
  0x13   : > { %s2258_s14 = scalar_select %p1925_p4, 1, 0 }
  0x14   : > { %s2259_s15 = scalar_select %p1930_p6, 1, 0 }
  0x15   : > { %s2261_s16 = scalar_select %p1935_p8, 1, 0 }
  0x16   : > { %2260 = sst [smem:[#allocation16_spill]] %s2259_s15  ;;  %s358_s18 = sshll.u32 %s1813_s17, 4  ;;  %s1939_s18 = int_to_ptr.vmem [resolvable:$true] %s358_s18 }
  0x17   : > { %p1468_p9 = pneg %p1935_p8  ;;  %s1814_s20 = smov [#allocation7]  }
  0x18   : > { %s374_s21 = sshll.u32 %s1814_s20, 4  ;;  %s1815_s22 = smov [#allocation8]   ;;  %s1950_s21 = int_to_ptr.vmem [resolvable:$true] %s374_s21 }
  0x19   : > { %p1946_p11 = pnand %p1468_p9, %p2249_p1  ;;  %s1952_s23 = sshll.u32 %s1815_s22, 4  ;;  %s403_s23 = int_to_ptr.vmem [resolvable:$true] %s1952_s23 }
  0x1a   : > { %s1623_s17 = scalar_lea.hbm %s2235_s3, 2048 }
  0x1b   : > { %p1624_p12 = scmp.ne.s32.totalorder %s2235_s3, %s1623_s17  ;;  %p1962_p13 = pneg %p1946_p11 }
  0x1c   : > { %p1630_p5 = scmp.lt.u32.totalorder %s1623_s17, %s2235_s3 }
  0x1d   : > { %p1626_p0 = pnand %p1962_p13, %p1624_p12 }
  0x1f   : > { %p1627_p3 = pneg %p1626_p0 }
  0x21   : > { %p1632_p7 = pnand %p1630_p5, %p1627_p3 }
  0x23   : > { %1635 = shalt.err (!%p1632_p7)
}
  0x24   : > { %s1636_s25 = scalar_lea.vmem %s1939_s18, 2048  ;;  %p1644_p2 = scmp.lt.s32.totalorder %s1939_s18, %s1939_s18 }
  0x25   : > { %p1637_p9 = scmp.ne.s32.totalorder %s1939_s18, %s1636_s25  ;;  %p1645_p6 = scmp.lt.s32.totalorder %s1636_s25, %s1636_s25 }
  0x27   : > { %p1639_p10 = pnand %p1637_p9, %p1962_p13  ;;  %p1646_p12 = por %p1645_p6, %p1644_p2 }
  0x29   : > { %p1640_p1 = pneg %p1639_p10 }
  0x2b   : > { %p1647_p0 = pnand %p1646_p12, %p1640_p1 }
  0x2d   : > { %1650 = shalt.err (!%p1647_p0)
}
  0x2e   : > { %s1816_s15 = smov 128   ;;  %s1817_s24 = smov 8  }
  0x2f   : > { %1471 = dma.hbm_to_vmem [thread:$0]  (!%p1946_p11), %s2235_s3, 2048, %s1939_s18, [#allocation6], %s1816_s15, %s1816_s15, %s1817_s24  }
  0x30   : > { %s1651_s25 = scalar_lea.hbm %s2237_s5, 2048 }
  0x31   : > { %p1652_p1 = scmp.ne.s32.totalorder %s2237_s5, %s1651_s25  ;;  %p1658_p10 = scmp.lt.u32.totalorder %s1651_s25, %s2237_s5 }
  0x33   : > { %p1654_p2 = pnand %p1652_p1, %p1962_p13 }
  0x35   : > { %p1655_p6 = pneg %p1654_p2 }
  0x37   : > { %p1660_p3 = pnand %p1658_p10, %p1655_p6 }
  0x39   : > { %1663 = shalt.err (!%p1660_p3)
}
  0x3a   : > { %s1664_s18 = scalar_lea.vmem %s1950_s21, 2048  ;;  %p1672_p12 = scmp.lt.s32.totalorder %s1950_s21, %s1950_s21 }
  0x3b   : > { %p1665_p5 = scmp.ne.s32.totalorder %s1950_s21, %s1664_s18  ;;  %p1673_p0 = scmp.lt.s32.totalorder %s1664_s18, %s1664_s18 }
  0x3d   : > { %p1667_p7 = pnand %p1665_p5, %p1962_p13  ;;  %p1674_p1 = por %p1673_p0, %p1672_p12 }
  0x3f   : > { %p1668_p9 = pneg %p1667_p7 }
  0x41   : > { %p1675_p2 = pnand %p1674_p1, %p1668_p9 }
  0x43   : > { %1678 = shalt.err (!%p1675_p2)
}
  0x44   : > { %1474 = dma.hbm_to_vmem [thread:$0]  (!%p1946_p11), %s2237_s5, 2048, %s1950_s21, [#allocation6], %s1816_s15, %s1816_s15, %s1817_s24  }
  0x45   : > { %s1679_s30 = scalar_lea.hbm %s2243_s11, 2048 }
  0x46   : > { %p1680_p6 = scmp.ne.s32.totalorder %s2243_s11, %s1679_s30  ;;  %p1686_p5 = scmp.lt.u32.totalorder %s1679_s30, %s2243_s11 }
  0x48   : > { %p1682_p10 = pnand %p1680_p6, %p1962_p13 }
  0x4a   : > { %p1683_p3 = pneg %p1682_p10 }
  0x4c   : > { %p1688_p7 = pnand %p1686_p5, %p1683_p3 }
  0x4e   : > { %1691 = shalt.err (!%p1688_p7)
}
  0x4f   : > { %s1692_s18 = scalar_lea.vmem %s403_s23, 2048  ;;  %p1700_p1 = scmp.lt.s32.totalorder %s403_s23, %s403_s23 }
  0x50   : > { %p1693_p9 = scmp.ne.s32.totalorder %s403_s23, %s1692_s18  ;;  %p1701_p2 = scmp.lt.s32.totalorder %s1692_s18, %s1692_s18 }
  0x52   : > { %p1695_p12 = pnand %p1693_p9, %p1962_p13  ;;  %p1702_p4 = por %p1701_p2, %p1700_p1 }
  0x54   : > { %p1696_p0 = pneg %p1695_p12 }
  0x56   : > { %p1703_p8 = pnand %p1702_p4, %p1696_p0 }
  0x58   : > { %1706 = shalt.err (!%p1703_p8)
}
  0x59   : > { %s1818_s21 = smov 64   ;;  %s1819_s13 = smov 4  }
  0x5a   : > { %1477 = dma.hbm_to_vmem [thread:$0]  (!%p1946_p11), %s2243_s11, 2048, %s403_s23, [#allocation9], %s1818_s21, %s1818_s21, %s1819_s13  }
  0x5b   : > { %s2032_s9 = sadd.s32 1, %s1811_s28   ;;  %s38_s30 = sadd.s32 1, %s1807_s27 }
  0x5c   : > { %s35_s12 = ssub.s32 %s1811_s28, %s2032_s9  ;;  %p45_p8 = scmp.ne.s32.totalorder %s1807_s27, %s1803_s26 }
  0x5d   : > { %p36_p4 = scmp.eq.s32.totalorder %s35_s12, 0  ;;  %p46_p13 = scmp.eq.s32.totalorder %s1811_s28, 0 }
  0x5e   : > { %p1489_p6 = scmp.lt.s32.totalorder %s1811_s28, 2  ;;  %p2264_p3 = scmp.eq.s32.totalorder %s1916_s29, 1 }
  0x5f   : > { %s2042_s17 = scalar_select %p36_p4, %s1807_s27, %s38_s30  }
  0x60   : > { %p47_p10 = por %p46_p13, %p45_p8  ;;  %p2046_p5 = por %p2264_p3, %p45_p8 }
  0x61   : > { %s419_s19 = sand.u32 1, %s1807_s27   ;;  %s1428_s22 = sshll.u32 %s1811_s28, 8 }
  0x62   : > { %s1361_s23 = sshll.u32 %s419_s19, 4  ;;  %s2055_s21 = scalar_lea.hbm %s2232_s0, %s1428_s22 }
  0x63   : > { %s423_s13 = scalar_lea.vmem [#allocation2], %s1361_s23  ;;  %p2057_p11 = pnand %p1489_p6, %p47_p10 }
  0x64   : > { %s430_s4 = sshll.u32 %s423_s13, 4  ;;  %s2063_s12 = scalar_lea.sflag [#allocation3], %s419_s19  ;;  %s2061_s4 = int_to_ptr.vmem [resolvable:$true] %s430_s4 }
  0x65   : > { %s1707_s30 = scalar_lea.hbm %s2055_s21, 256  ;;  %p1709_p9 = pneg %p2057_p11 }
  0x66   : > { %p1708_p7 = scmp.ne.s32.totalorder %s2055_s21, %s1707_s30  ;;  %s1712_s25 = scalar_lea.hbm %s2232_s0, 512 }
  0x67   : > { %p1713_p1 = scmp.lt.u32.totalorder %s2055_s21, %s2232_s0  ;;  %p1714_p2 = scmp.lt.u32.totalorder %s1712_s25, %s1707_s30 }
  0x68   : > { %p1710_p12 = pnand %p1709_p9, %p1708_p7  ;;  %p1716_p8 = scmp.lt.u32.totalorder %s1707_s30, %s2055_s21 }
  0x69   : > { %p1715_p4 = por %p1714_p2, %p1713_p1 }
  0x6a   : > { %p1711_p0 = pneg %p1710_p12 }
  0x6b   : > { %p1717_p13 = por %p1716_p8, %p1715_p4 }
  0x6d   : > { %p1718_p6 = pnand %p1717_p13, %p1711_p0 }
  0x6f   : > { %1721 = shalt.err (!%p1718_p6)
}
  0x70   : > { %s1722_s19 = scalar_lea.vmem %s2061_s4, 256  ;;  %s1820_s22 = smov [#allocation2]  }
  0x71   : > { %p1723_p10 = scmp.ne.s32.totalorder %s2061_s4, %s1722_s19  ;;  %s1727_s23 = sshll.u32 %s1820_s22, 4  ;;  %s1728_s23 = int_to_ptr.vmem [resolvable:$false] %s1727_s23 }
  0x72   : > { %s1729_s18 = scalar_lea.vmem %s1728_s23, 512  ;;  %p1730_p12 = scmp.lt.s32.totalorder %s2061_s4, %s1728_s23 }
  0x73   : > { %p1725_p3 = pnand %p1723_p10, %p1709_p9  ;;  %p1731_p1 = scmp.lt.s32.totalorder %s1729_s18, %s1722_s19 }
  0x75   : > { %p1726_p7 = pneg %p1725_p3  ;;  %p1732_p2 = por %p1731_p1, %p1730_p12 }
  0x77   : > { %p1733_p4 = pnand %p1732_p2, %p1726_p7 }
  0x79   : > { %1736 = shalt.err (!%p1733_p4)
}
  0x7a   : > { %1481 = dma.hbm_to_vmem [thread:$0]  (!%p2057_p11), %s2055_s21, 256, %s2061_s4, %s2063_s12, %s1816_s15, %s1816_s15, %s1817_s24  }
  0x7b   : > { %p2267_p9 = scmp.ne.s32.totalorder %s2261_s16, 0 }
  0x7c   : > { %s2097_s30 = sand.u32 (!%p2267_p9), 1, %s1803_s26   ;;  %p2268_p0 = scmp.ne.s32.totalorder (!%p2267_p9), %s2258_s14, 0 }
  0x7d   : > { %442 = sbr.rel (%p2267_p9) target bundleno = 1257 (0x4e9), region = 72  ;;  %s1365_s25 = sshll.u32 (!%p2267_p9), %s2097_s30, 4 }
  0x7e   : > { %s445_s13 = scalar_lea.sflag (!%p2267_p9), [#allocation3], %s2097_s30  ;;  %s448_s8 = scalar_lea.vmem (!%p2267_p9), [#allocation2], %s1365_s25 }
  0x84   : > { %1782 = dma.done.wait (%p2268_p0), %s445_s13, 256  }
  0x85   : > { %1784 = vsyncadd (%p2268_p0), %s445_s13, 4294967040  ;;  %p2269_p11 = scmp.eq.s32.totalorder %s1916_s29, 0 }
  0x87   : > { %1786 = dma.done.wait (%p2269_p11), [#allocation6], 4096   ;;  %p2270_p8 = pmov %p2269_p11 }
  0x89   : > { %1788 = vsyncadd (%p2270_p8), [#allocation6], 4294963200  ;;  %p2271_p13 = pmov %p2270_p8 }
  0x8a   : > { %p2272_p6 = pmov %p2270_p8 }
  0x8b   : > { %1790 = dma.done.wait (%p2271_p13), [#allocation9], 2048  }
  0x8c   : > { %1792 = vsyncadd (%p2272_p6), [#allocation9], 4294965248  ;;  %v2115_v0 = vld [vmem:[%s448_s8] sm:$0xff]  ;;  %v2117_v1 = vld [vmem:[%s448_s8 + $0x8] sm:$0xff]  ;;  %v1821_v15 = vmov 0   ;;  %v576_v50 = vlaneseq  ;;  %s2273_s16 = sld [smem:[#allocation18_spill]] }
  0x8d   : > { %510 = vadd.xlane.f32.xlu0 %v2115_v0  ;;  %v517_v2 = vmul.f32 %v2115_v0, %v2115_v0  ;;  %v518_v3 = vmul.f32 %v2117_v1, %v2117_v1  ;;  %v1538_v4 = vld [vmem:[#allocation7 + $0x4] ss:$8 sps:$4 sm:$0xff]   ;;  %v1540_v5 = vld [vmem:[#allocation7] ss:$8 sps:$4 sm:$0xff]   ;;  %v1541_v6 = vld [vmem:[#allocation7 + $0x14] ss:$8 sps:$4 sm:$0xff]   ;;  %698 = vmatprep.mubr.bf16.mxu0 %v1821_v15 }
  0x8e   : > { %666 = vmatprep.subr.bf16.mxu0 %v1538_v4  ;;  %v1543_v7 = vld [vmem:[#allocation7 + $0x10] ss:$8 sps:$4 sm:$0xff]   ;;  %v1544_v8 = vld [vmem:[#allocation7 + $0x24] ss:$8 sps:$4 sm:$0xff]   ;;  %v1546_v9 = vld [vmem:[#allocation7 + $0x20] ss:$8 sps:$4 sm:$0xff]   ;;  %873 = vmatprep.mubr.bf16.mxu1 %v1821_v15 }
  0x8f   : > { %519 = vadd.xlane.f32.xlu1 %v517_v2  ;;  %667 = vmatpush1.bf16.msra.mxu0 %v1540_v5  ;;  %v1547_v10 = vld [vmem:[#allocation7 + $0x34] ss:$8 sps:$4 sm:$0xff]   ;;  %v1549_v11 = vld [vmem:[#allocation7 + $0x30] ss:$8 sps:$4 sm:$0xff]   ;;  %v1550_v12 = vld [vmem:[#allocation7 + $0x44] ss:$8 sps:$4 sm:$0xff]  }
  0x90   : > { %668 = vmatprep.subr.bf16.mxu0 %v1541_v6  ;;  %v1552_v13 = vld [vmem:[#allocation7 + $0x40] ss:$8 sps:$4 sm:$0xff]   ;;  %v1553_v14 = vld [vmem:[#allocation7 + $0x54] ss:$8 sps:$4 sm:$0xff]   ;;  %v1555_v16 = vld [vmem:[#allocation7 + $0x50] ss:$8 sps:$4 sm:$0xff]   ;;  %1536 = vset.pattern.permute.xlu0 %v1821_v15 }
  0x91   : > { %512 = vadd.xlane.f32.xlu0 %v2117_v1  ;;  %v1556_v17 = vld [vmem:[#allocation7 + $0x64] ss:$8 sps:$4 sm:$0xff]   ;;  %1537 = vset.pattern.permute.xlu1 %v1821_v15  ;;  %v1558_v18 = vld [vmem:[#allocation7 + $0x60] ss:$8 sps:$4 sm:$0xff]   ;;  %v1559_v19 = vld [vmem:[#allocation7 + $0x74] ss:$8 sps:$4 sm:$0xff]  }
  0x92   : > { %v1561_v20 = vld [vmem:[#allocation7 + $0x70] ss:$8 sps:$4 sm:$0xff]   ;;  %v1370_v40 = vld [vmem:[%s2233_s1] ss:$0 sm:$0xff]  ;;  %v577_v51 = vshrl.u32 %v576_v50, 7  ;;  %v819_v50 = vld [vmem:[%s2242_s10 + $0x8] sm:$0xff] }
  0x93   : > { %521 = vadd.xlane.f32.xlu1 %v518_v3  ;;  %669 = vmatpush1.bf16.msra.mxu0 %v1543_v7  ;;  %v1371_v45 = vld [vmem:[%s2234_s2] ss:$0 sm:$0xff]  ;;  %s2274_s21 = sld [smem:[#allocation19_spill]]  ;;  %vm837_vm0 = vcmask 130048   ;;  %s2275_s19 = sld [smem:[#allocation17_spill]] }
  0x94   : > { %670 = vmatprep.subr.bf16.mxu0 %v1544_v8  ;;  %v2140_v52 = vsub.s32 0, %v577_v51  ;;  %v574_v53 = vld [vmem:[%s2238_s6] sm:$0x3]  ;;  %v2145_v54 = vsub.s32 1, %v577_v51  ;;  %s2276_s18 = sld [smem:[#allocation20_spill]]  ;;  %s502_s13 = scalar_lea.vmem [#allocation10], %s1365_s25 }
  0x95   : > { %s1253_s8 = sshll.u32 %s502_s13, 4  ;;  %s1429_s14 = sshll.u32 %s1916_s29, 8  ;;  %s2182_s8 = int_to_ptr.vmem [resolvable:$true] %s1253_s8 }
  0x96   : > { %v579_v55 = vrot.slane %v574_v53, %v2140_v52  ;;  %v583_v56 = vrot.slane %v574_v53, %v2145_v54  ;;  %s2277_s24 = sld [smem:[#allocation21_spill]]  ;;  %s1240_s25 = scalar_lea.sflag [#allocation4], %s2097_s30 }
  0x97   : > { %671 = vmatpush1.bf16.msra.mxu0 %v1546_v9  ;;  %s1737_s4 = scalar_lea.vmem %s2182_s8, 256  ;;  %s1822_s29 = smov [#allocation10]  }
  0x98   : > { %672 = vmatprep.subr.bf16.mxu0 %v1547_v10  ;;  %p1738_p10 = scmp.ne.s32.totalorder %s2182_s8, %s1737_s4  ;;  %s1741_s12 = sshll.u32 %s1822_s29, 4  ;;  %s1742_s12 = int_to_ptr.vmem [resolvable:$false] %s1741_s12 }
  0x99   : > { %p1744_p12 = scmp.lt.s32.totalorder %s2182_s8, %s1742_s12 }
  0x9a   : > { %p1739_p3 = pnand %p1738_p10, %p2046_p5 }
  0x9b   : > { %673 = vmatpush1.bf16.msra.mxu0 %v1549_v11 }
  0x9c   : > { %674 = vmatprep.subr.bf16.mxu0 %v1550_v12  ;;  %p1740_p7 = pneg %p1739_p3 }
  0x9f   : > { %675 = vmatpush1.bf16.msra.mxu0 %v1552_v13 }
  0xa0   : > { %676 = vmatprep.subr.bf16.mxu0 %v1553_v14 }
  0xa3   : > { %677 = vmatpush1.bf16.msra.mxu0 %v1555_v16 }
  0xa4   : > { %678 = vmatprep.subr.bf16.mxu0 %v1556_v17 }
  0xa7   : > { %679 = vmatpush1.bf16.msra.mxu0 %v1558_v18 }
  0xa8   : > { %680 = vmatprep.subr.bf16.mxu0 %v1559_v19 }
  0xab   : > { %681 = vmatpush1.bf16.msra.mxu0 %v1561_v20 }
 0x11a   : > { %v511_v21 = vpop.xlane.xlu0 %510 }
 0x11b   : > { %v515_v22 = vmul.f32 0.0078125, %v511_v21 }
 0x11c   : > { %v520_v23 = vpop.xlane.xlu1 %519 }
 0x11d   : > { %v525_v24 = vmul.f32 %v515_v22, %v515_v22  ;;  %v523_v25 = vmul.f32 0.0078125, %v520_v23  ;;  %v531_v37 = vsub.f32 %v2115_v0, %v515_v22 }
 0x11e   : > { %v513_v26 = vpop.xlane.xlu0 %512 }
 0x11f   : > { %v527_v27 = vsub.f32 %v523_v25, %v525_v24  ;;  %v516_v28 = vmul.f32 0.0078125, %v513_v26 }
 0x120   : > { %v522_v29 = vpop.xlane.xlu1 %521 }
 0x121   : > { %v529_v30 = vmax.f32 %v527_v27, 0.0  ;;  %v526_v31 = vmul.f32 %v516_v28, %v516_v28  ;;  %v524_v32 = vmul.f32 0.0078125, %v522_v29  ;;  %v532_v41 = vsub.f32 %v2117_v1, %v516_v28 }
 0x123   : > { %v533_v33 = vadd.f32 1e-06, %v529_v30  ;;  %v528_v34 = vsub.f32 %v524_v32, %v526_v31 }
 0x125   : > { %1603 = vrsqrt.f32 %v533_v33  ;;  %v530_v35 = vmax.f32 %v528_v34, 0.0 }
 0x127   : > { %v534_v36 = vadd.f32 1e-06, %v530_v35 }
 0x129   : > { %1605 = vrsqrt.f32 %v534_v36 }
 0x12f   : > { %v1604_v38 = vpop.eup %1603 }
 0x130   : > { %v537_v39 = vmul.f32 %v1604_v38, %v531_v37 }
 0x132   : > { %v546_v44 = vmul.f32 %v1370_v40, %v537_v39 }
 0x133   : > { %v1606_v42 = vpop.eup %1605 }
 0x134   : > { %v538_v43 = vmul.f32 %v1606_v42, %v532_v41  ;;  %v555_v47 = vadd.f32 %v1371_v45, %v546_v44 }
 0x136   : > { %v547_v46 = vmul.f32 %v1370_v40, %v538_v43 }
 0x138   : > { %v556_v48 = vadd.f32 %v1371_v45, %v547_v46 }
 0x13a   : > { %v2137_v49 = vpack.c.bf16 %v556_v48, %v555_v47  ;;  %v818_v48 = vld [vmem:[%s2242_s10] sm:$0xff] }
 0x13c   : > { %699 = vmatmul.mubr.bf16.vlgmr.msra.gmra.mrb[0].mxu0 %v2137_v49 }
 0x20f   : > { %v700_v57 = vpop.f32.mrb[0].mxu0 }
 0x210   : > { %v701_v58 = vadd.f32 %v700_v57, %v579_v55  ;;  %v702_v59 = vpop.f32.mrb[1].mxu0 }
 0x211   : > { %v703_v60 = vadd.f32 %v702_v59, %v583_v56  ;;  %v704_v61 = vpop.f32.mrb[2].mxu0 }
 0x212   : > { %v709_v62 = vmul.f32 %v701_v58, %v701_v58  ;;  %v705_v63 = vadd.f32 %v704_v61, %v579_v55  ;;  %v706_v2 = vpop.f32.mrb[3].mxu0 }
 0x213   : > { %v710_v3 = vmul.f32 %v703_v60, %v703_v60  ;;  %v707_v4 = vadd.f32 %v706_v2, %v583_v56 }
 0x214   : > { %v713_v5 = vmul.f32 %v709_v62, %v701_v58  ;;  %v711_v6 = vmul.f32 %v705_v63, %v705_v63 }
 0x215   : > { %v714_v7 = vmul.f32 %v710_v3, %v703_v60  ;;  %v712_v8 = vmul.f32 %v707_v4, %v707_v4 }
 0x216   : > { %v717_v9 = vmul.f32 0.044715, %v713_v5  ;;  %v715_v10 = vmul.f32 %v711_v6, %v705_v63 }
 0x217   : > { %v718_v11 = vmul.f32 0.044715, %v714_v7  ;;  %v716_v12 = vmul.f32 %v712_v8, %v707_v4  ;;  %v784_v7 = vld [vmem:[%s2239_s7] sm:$0x3] }
 0x218   : > { %v721_v13 = vadd.f32 %v717_v9, %v701_v58  ;;  %v719_v14 = vmul.f32 0.044715, %v715_v10  ;;  %v793_v10 = vrot.slane %v784_v7, %v2145_v54 }
 0x219   : > { %v722_v16 = vadd.f32 %v718_v11, %v703_v60  ;;  %v720_v17 = vmul.f32 0.044715, %v716_v12  ;;  %v800_v11 = vld [vmem:[%s2273_s16] sm:$0x3]  ;;  %v789_v12 = vrot.slane %v784_v7, %v2140_v52 }
 0x21a   : > { %v725_v18 = vmul.f32 0.7978846, %v721_v13  ;;  %v723_v19 = vadd.f32 %v719_v14, %v705_v63 }
 0x21b   : > { %v726_v20 = vmul.f32 0.7978846, %v722_v16  ;;  %v724_v21 = vadd.f32 %v720_v17, %v707_v4 }
 0x21c   : > { %1607 = vtanh.f32 %v725_v18  ;;  %v727_v22 = vmul.f32 0.7978846, %v723_v19 }
 0x21d   : > { %1609 = vtanh.f32 %v726_v20  ;;  %v728_v23 = vmul.f32 0.7978846, %v724_v21  ;;  %v809_v20 = vrot.slane %v800_v11, %v2145_v54  ;;  %v805_v21 = vrot.slane %v800_v11, %v2140_v52 }
 0x21e   : > { %1611 = vtanh.f32 %v727_v22 }
 0x21f   : > { %1613 = vtanh.f32 %v728_v23 }
 0x226   : > { %v1608_v24 = vpop.eup %1607 }
 0x227   : > { %v1610_v25 = vpop.eup %1609  ;;  %v733_v26 = vadd.f32 1.0, %v1608_v24 }
 0x228   : > { %v1612_v27 = vpop.eup %1611  ;;  %v734_v28 = vadd.f32 1.0, %v1610_v25 }
 0x229   : > { %v1614_v29 = vpop.eup %1613  ;;  %v737_v30 = vmul.f32 0.5, %v733_v26  ;;  %v735_v31 = vadd.f32 1.0, %v1612_v27 }
 0x22a   : > { %v738_v32 = vmul.f32 0.5, %v734_v28  ;;  %v736_v33 = vadd.f32 1.0, %v1614_v29 }
 0x22b   : > { %v741_v34 = vmul.f32 %v737_v30, %v701_v58  ;;  %v739_v35 = vmul.f32 0.5, %v735_v31 }
 0x22c   : > { %v742_v36 = vmul.f32 %v738_v32, %v703_v60  ;;  %v740_v37 = vmul.f32 0.5, %v736_v33 }
 0x22d   : > { %v743_v38 = vmul.f32 %v739_v35, %v705_v63  ;;  %v754_v41 = vmul.f32 %v741_v34, %v741_v34  ;;  %v1562_v35 = vld [vmem:[%s2274_s21] sm:$0xff]   ;;  %s2187_s21 = scalar_lea.hbm %s2277_s24, %s1429_s14 }
 0x22e   : > { %v745_v39 = vadd.f32 %v742_v36, %v741_v34  ;;  %v744_v40 = vmul.f32 %v740_v37, %v707_v4  ;;  %v755_v42 = vmul.f32 %v742_v36, %v742_v36  ;;  %v1568_v37 = vld [vmem:[#allocation5 + $0x14] ss:$8 sps:$4 sm:$0xff]  }
 0x22f   : > { %v756_v44 = vmul.f32 %v743_v38, %v743_v38 }
 0x230   : > { %746 = vadd.xlane.f32.xlu0 %v745_v39  ;;  %v748_v43 = vadd.f32 %v744_v40, %v743_v38  ;;  %v757_v45 = vmul.f32 %v744_v40, %v744_v40  ;;  %v758_v46 = vadd.f32 %v755_v42, %v754_v41  ;;  %v1571_v39 = vld [vmem:[#allocation5 + $0x24] ss:$8 sps:$4 sm:$0xff]   ;;  %v1574_v41 = vld [vmem:[#allocation5 + $0x34] ss:$8 sps:$4 sm:$0xff]   ;;  %v1572_v42 = vld [vmem:[#allocation5 + $0x30] ss:$8 sps:$4 sm:$0xff]  }
 0x232   : > { %749 = vadd.xlane.f32.xlu1 %v748_v43  ;;  %v761_v47 = vadd.f32 %v757_v45, %v756_v44  ;;  %v1577_v43 = vld [vmem:[#allocation5 + $0x44] ss:$8 sps:$4 sm:$0xff]   ;;  %v1575_v44 = vld [vmem:[#allocation5 + $0x40] ss:$8 sps:$4 sm:$0xff]   ;;  %v1580_v45 = vld [vmem:[#allocation5 + $0x54] ss:$8 sps:$4 sm:$0xff]  }
 0x234   : > { %759 = vadd.xlane.f32.xlu0 %v758_v46  ;;  %v1578_v46 = vld [vmem:[#allocation5 + $0x50] ss:$8 sps:$4 sm:$0xff]  }
 0x236   : > { %762 = vadd.xlane.f32.xlu1 %v761_v47  ;;  %v1583_v47 = vld [vmem:[#allocation5 + $0x64] ss:$8 sps:$4 sm:$0xff]  }
 0x247   : > { %829 = vperm.xlu1 %1537, %v819_v50   ;;  %v1584_v50 = vld [vmem:[#allocation5 + $0x70] ss:$8 sps:$4 sm:$0xff]  }
 0x24a   : > { %824 = vperm.xlu0 %1536, %v818_v48   ;;  %v1586_v48 = vld [vmem:[#allocation5 + $0x74] ss:$8 sps:$4 sm:$0xff]  }
 0x2bd   : > { %v747_v51 = vpop.xlane.xlu0 %746 }
 0x2be   : > { %v752_v53 = vmul.f32 0.00390625, %v747_v51  ;;  %v1587_v51 = vld [vmem:[#allocation8 + $0x40] sm:$0xff]  }
 0x2bf   : > { %v750_v55 = vpop.xlane.xlu1 %749  ;;  %1430 = vmatprep.subr.bf16.mxu0 %v1587_v51  ;;  %v1406_v51 = vld [vmem:[%s2276_s18] ss:$0 sm:$0xff] }
 0x2c0   : > { %v753_v56 = vmul.f32 0.00390625, %v750_v55  ;;  %v766_v58 = vmul.f32 %v752_v53, %v752_v53  ;;  %v772_v8 = vsub.f32 %v741_v34, %v752_v53  ;;  %v773_v9 = vsub.f32 %v742_v36, %v752_v53  ;;  %v1565_v34 = vld [vmem:[#allocation5 + $0x4] ss:$8 sps:$4 sm:$0xff]   ;;  %v1563_v36 = vld [vmem:[#allocation5] ss:$8 sps:$4 sm:$0xff]  }
 0x2c1   : > { %v760_v57 = vpop.xlane.xlu0 %759  ;;  %v1588_v53 = vld [vmem:[#allocation8] sm:$0xff]   ;;  %v1589_v55 = vld [vmem:[#allocation8 + $0x48] sm:$0xff]  }
 0x2c2   : > { %v764_v59 = vmul.f32 0.00390625, %v760_v57  ;;  %v767_v62 = vmul.f32 %v753_v56, %v753_v56  ;;  %v774_v14 = vsub.f32 %v743_v38, %v753_v56  ;;  %v775_v16 = vsub.f32 %v744_v40, %v753_v56  ;;  %v1566_v38 = vld [vmem:[#allocation5 + $0x10] ss:$8 sps:$4 sm:$0xff]   ;;  %v1569_v40 = vld [vmem:[#allocation5 + $0x20] ss:$8 sps:$4 sm:$0xff]   ;;  %1431 = vmatpush3.bf16.msra.mxu0 %v1588_v53 }
 0x2c3   : > { %v763_v60 = vpop.xlane.xlu1 %762  ;;  %v1590_v56 = vld [vmem:[#allocation8 + $0x8] sm:$0xff]   ;;  %1432 = vmatprep.subr.bf16.mxu0 %v1589_v55  ;;  %v1591_v57 = vld [vmem:[#allocation8 + $0x50] sm:$0xff]  }
 0x2c4   : > { %v768_v61 = vsub.f32 %v764_v59, %v766_v58  ;;  %v765_v63 = vmul.f32 0.00390625, %v763_v60  ;;  %v1592_v58 = vld [vmem:[#allocation8 + $0x10] sm:$0xff]   ;;  %v1593_v59 = vld [vmem:[#allocation8 + $0x58] sm:$0xff]  }
 0x2c5   : > { %v1594_v60 = vld [vmem:[#allocation8 + $0x18] sm:$0xff]  }
 0x2c6   : > { %v770_v2 = vmax.f32 %v768_v61, 0.0  ;;  %v769_v3 = vsub.f32 %v765_v63, %v767_v62  ;;  %1433 = vmatpush3.bf16.msra.mxu0 %v1590_v56  ;;  %v1595_v61 = vld [vmem:[#allocation8 + $0x60] sm:$0xff]   ;;  %v1598_v63 = vld [vmem:[#allocation8 + $0x28] sm:$0xff]  }
 0x2c7   : > { %1434 = vmatprep.subr.bf16.mxu0 %v1591_v57  ;;  %v1596_v62 = vld [vmem:[#allocation8 + $0x20] sm:$0xff]  }
 0x2c8   : > { %v776_v4 = vadd.f32 1e-05, %v770_v2  ;;  %v771_v5 = vmax.f32 %v769_v3, 0.0  ;;  %v1599_v2 = vld [vmem:[#allocation8 + $0x70] sm:$0xff]  }
 0x2c9   : > { %v1600_v3 = vld [vmem:[#allocation8 + $0x30] sm:$0xff]  }
 0x2ca   : > { %1615 = vrsqrt.f32 %v776_v4  ;;  %v777_v6 = vadd.f32 1e-05, %v771_v5  ;;  %1435 = vmatpush3.bf16.msra.mxu0 %v1592_v58  ;;  %v1601_v4 = vld [vmem:[#allocation8 + $0x78] sm:$0xff]  }
 0x2cb   : > { %1436 = vmatprep.subr.bf16.mxu0 %v1593_v59  ;;  %v1602_v5 = vld [vmem:[#allocation8 + $0x38] sm:$0xff]  }
 0x2cc   : > { %1617 = vrsqrt.f32 %v777_v6  ;;  %v825_v6 = vpop.permute.xlu0 %824 }
 0x2ce   : > { %1437 = vmatpush3.bf16.msra.mxu0 %v1594_v60 }
 0x2cf   : > { %1438 = vmatprep.subr.bf16.mxu0 %v1595_v61 }
 0x2d2   : > { %1439 = vmatpush3.bf16.msra.mxu0 %v1596_v62 }
 0x2d4   : > { %v1616_v13 = vpop.eup %1615 }
 0x2d5   : > { %v781_v17 = vmul.f32 %v1616_v13, %v773_v9  ;;  %v780_v18 = vmul.f32 %v1616_v13, %v772_v8  ;;  %v830_v8 = vpop.permute.xlu1 %829 }
 0x2d6   : > { %v1618_v19 = vpop.eup %1617 }
 0x2d7   : > { %v783_v22 = vmul.f32 %v1618_v19, %v775_v16  ;;  %v797_v23 = vmul.f32 %v793_v10, %v781_v17  ;;  %v782_v24 = vmul.f32 %v1618_v19, %v774_v14  ;;  %v796_v25 = vmul.f32 %v789_v12, %v780_v18  ;;  %v900_v19 = vld [vmem:[%s2275_s19] sm:$0x3]  ;;  %s1743_s19 = scalar_lea.vmem %s1742_s12, 512 }
 0x2d8   : > { %p1745_p1 = scmp.lt.s32.totalorder %s1743_s19, %s1737_s4 }
 0x2d9   : > { %v799_v26 = vmul.f32 %v793_v10, %v783_v22  ;;  %v798_v27 = vmul.f32 %v789_v12, %v782_v24  ;;  %v813_v28 = vadd.f32 %v809_v20, %v797_v23  ;;  %v812_v30 = vadd.f32 %v805_v21, %v796_v25 }
 0x2da   : > { %v909_v22 = vrot.slane %v900_v19, %v2145_v54  ;;  %p1746_p2 = por %p1745_p1, %p1744_p12 }
 0x2db   : > { %v815_v29 = vadd.f32 %v809_v20, %v799_v26  ;;  %v814_v31 = vadd.f32 %v805_v21, %v798_v27  ;;  %v905_v20 = vrot.slane %v900_v19, %v2140_v52 }
 0x2dc   : > { %p1747_p4 = pnand %p1746_p2, %p1740_p7 }
 0x2dd   : > { %v821_v32 = vpack.c.bf16 %v815_v29, %v813_v28  ;;  %v820_v33 = vpack.c.bf16 %v814_v31, %v812_v30 }
 0x2df   : > { %841 = vmatprep.subr.bf16.mxu1 %v821_v32 }
 0x2e0   : > { %842 = vmatpush1.bf16.msra.mxu1 %v820_v33 }
 0x2e1   : > { %992 = vmatprep.subr.bf16.mxu1 %v1565_v34 }
 0x2e3   : > { %1389 = vmatmul.mubr.msk.bf16.vlgmr.msra.gmra.mrb[0].mxu1 %vm837_vm0, %v1562_v35 }
 0x2e4   : > { %993 = vmatpush1.bf16.msra.mxu1 %v1563_v36  ;;  %1024 = vmatprep.mubr.bf16.mxu1 %v1821_v15  ;;  %v1581_v15 = vld [vmem:[#allocation5 + $0x60] ss:$8 sps:$4 sm:$0xff]  }
 0x2e5   : > { %994 = vmatprep.subr.bf16.mxu1 %v1568_v37 }
 0x2e8   : > { %995 = vmatpush1.bf16.msra.mxu1 %v1566_v38 }
 0x2e9   : > { %996 = vmatprep.subr.bf16.mxu1 %v1571_v39 }
 0x2ec   : > { %997 = vmatpush1.bf16.msra.mxu1 %v1569_v40 }
 0x2ed   : > { %998 = vmatprep.subr.bf16.mxu1 %v1574_v41 }
 0x2f0   : > { %999 = vmatpush1.bf16.msra.mxu1 %v1572_v42 }
 0x2f1   : > { %1000 = vmatprep.subr.bf16.mxu1 %v1577_v43 }
 0x2f4   : > { %1001 = vmatpush1.bf16.msra.mxu1 %v1575_v44 }
 0x2f5   : > { %1002 = vmatprep.subr.bf16.mxu1 %v1580_v45 }
 0x2f8   : > { %1003 = vmatpush1.bf16.msra.mxu1 %v1578_v46 }
 0x2f9   : > { %1004 = vmatprep.subr.bf16.mxu1 %v1583_v47 }
 0x2fc   : > { %1005 = vmatpush1.bf16.msra.mxu1 %v1581_v15 }
 0x2fd   : > { %1006 = vmatprep.subr.bf16.mxu1 %v1586_v48 }
 0x300   : > { %1007 = vmatpush1.bf16.msra.mxu1 %v1584_v50 }
 0x303   : > { %1025 = vmatmul.mubr.bf16.vlgmr.msra.gmra.mrb[4].mxu1 %v2137_v49  ;;  %v1597_v49 = vld [vmem:[#allocation8 + $0x68] sm:$0xff]  }
 0x304   : > { %1440 = vmatprep.subr.bf16.mxu0 %v1597_v49 }
 0x305   : > { %1441 = vmatpush3.bf16.msra.mxu0 %v1598_v63 }
 0x306   : > { %1442 = vmatprep.subr.bf16.mxu0 %v1599_v2 }
 0x309   : > { %1443 = vmatpush3.bf16.msra.mxu0 %v1600_v3 }
 0x30a   : > { %1444 = vmatprep.subr.bf16.mxu0 %v1601_v4 }
 0x30d   : > { %1445 = vmatpush3.bf16.msra.mxu0 %v1602_v5 }
 0x3b6   : > { %v875_v7 = vpop.f32.mrb[0].mxu1 }
 0x3b7   : > { %v877_v9 = vpop.f32.mrb[1].mxu1  ;;  %v876_v10 = vadd.f32 %v875_v7, %v825_v6 }
 0x3b8   : > { %v879_v11 = vpop.f32.mrb[2].mxu1  ;;  %v878_v14 = vadd.f32 %v877_v9, %v825_v6 }
 0x3b9   : > { %v880_v12 = vadd.f32 %v879_v11, %v830_v8  ;;  %v881_v13 = vpop.f32.mrb[3].mxu1 }
 0x3ba   : > { %v882_v16 = vadd.f32 %v881_v13, %v830_v8 }
 0x3bb   : > { %v1055_v17 = vpack.c.bf16 %v880_v12, %v876_v10 }
 0x3bc   : > { %v1056_v18 = vpack.c.bf16 %v882_v16, %v878_v14 }
 0x3d6   : > { %v1026_v21 = vpop.f32.mrb[4].mxu1 }
 0x3d7   : > { %v1028_v23 = vpop.f32.mrb[5].mxu1  ;;  %v1027_v25 = vadd.f32 %v1026_v21, %v905_v20 }
 0x3d8   : > { %v1030_v24 = vpop.f32.mrb[6].mxu1  ;;  %v1029_v28 = vadd.f32 %v1028_v23, %v909_v22 }
 0x3d9   : > { %v1031_v26 = vadd.f32 %v1030_v24, %v905_v20  ;;  %v1032_v27 = vpop.f32.mrb[7].mxu1 }
 0x3da   : > { %v1033_v29 = vadd.f32 %v1032_v27, %v909_v22 }
 0x3db   : > { %v1035_v30 = vpack.c.bf16 %v1031_v26, %v1027_v25 }
 0x3dc   : > { %v1036_v31 = vpack.c.bf16 %v1033_v29, %v1029_v28 }
 0x3dd   : > { %v1037_v32 = vmul.bf16 %v1035_v30, %v1035_v30 }
 0x3de   : > { %v1038_v33 = vmul.bf16 %v1036_v31, %v1036_v31 }
 0x3df   : > { %v1039_v34 = vmul.bf16 %v1037_v32, %v1035_v30 }
 0x3e0   : > { %v1040_v35 = vmul.bf16 %v1038_v33, %v1036_v31 }
 0x3e1   : > { %v1041_v36 = vmul.bf16 1027030327, %v1039_v34 }
 0x3e2   : > { %v1042_v37 = vmul.bf16 1027030327, %v1040_v35 }
 0x3e3   : > { %v1043_v38 = vadd.bf16 %v1041_v36, %v1035_v30 }
 0x3e4   : > { %v1044_v52 = vadd.bf16 %v1042_v37, %v1036_v31 }
 0x3e5   : > { %v1045_v39 = vmul.bf16 1061961548, %v1043_v38 }
 0x3e6   : > { %v1046_v40 = vmul.bf16 1061961548, %v1044_v52 }
 0x3e7   : > { %1619 = vtanh.bf16 %v1045_v39 }
 0x3e8   : > { %1621 = vtanh.bf16 %v1046_v40 }
 0x3f2   : > { %v1620_v54 = vpop.eup %1619 }
 0x3f3   : > { %v1622_v41 = vpop.eup %1621  ;;  %v1049_v42 = vadd.bf16 1065369472, %v1620_v54 }
 0x3f4   : > { %v1050_v43 = vadd.bf16 1065369472, %v1622_v41 }
 0x3f5   : > { %v1051_v44 = vmul.bf16 1056980736, %v1049_v42 }
 0x3f6   : > { %v1052_v45 = vmul.bf16 1056980736, %v1050_v43 }
 0x3f7   : > { %v1053_v46 = vmul.bf16 %v1051_v44, %v1035_v30 }
 0x3f8   : > { %v1054_v47 = vmul.bf16 %v1052_v45, %v1036_v31 }
 0x3f9   : > { %v1057_v15 = vmul.bf16 %v1055_v17, %v1053_v46 }
 0x3fa   : > { %v1058_v48 = vmul.bf16 %v1056_v18, %v1054_v47 }
 0x3fc   : > { %1226 = vmatprep.mubr.bf16.mxu0 %v1058_v48 }
 0x3fd   : > { %1227 = vmatmul.mubr.bf16.vlgmr.msra.gmra.mrb[4].mxu0 %v1057_v15 }
 0x4d0   : > { %v1446_v50 = vpop.f32.mrb[4].mxu0 }
 0x4d1   : > { %v1447_v53 = vpop.f32.mrb[5].mxu0 }
 0x4d2   : > { %v1448_v55 = vadd.f32 %v1447_v53, %v1446_v50  ;;  %v1449_v56 = vpop.f32.mrb[6].mxu0 }
 0x4d3   : > { %v1450_v57 = vpop.f32.mrb[7].mxu0 }
 0x4d4   : > { %v1229_v58 = vadd.f32 %v1448_v55, %v1406_v51  ;;  %v1451_v59 = vadd.f32 %v1450_v57, %v1449_v56 }
 0x4d6   : > { %v1235_v60 = vadd.f32 %v1229_v58, %v2115_v0  ;;  %v1232_v61 = vadd.f32 %v1451_v59, %v1406_v51 }
 0x4d8   : > { %1237 = vst [vmem:[%s502_s13] sm:$0xff] %v1235_v60  ;;  %v1236_v62 = vadd.f32 %v1232_v61, %v2117_v1 }
 0x4da   : > { %1238 = vst [vmem:[%s502_s13 + $0x8] sm:$0xff] %v1236_v62 }
 0x4db   : > { %1750 = shalt.err (!%p1747_p4)
}
 0x4dc   : > { %s1751_s22 = scalar_lea.hbm %s2187_s21, 256  ;;  %s1755_s13 = scalar_lea.hbm %s2277_s24, 512 }
 0x4dd   : > { %p1752_p9 = scmp.ne.s32.totalorder %s2187_s21, %s1751_s22  ;;  %p1756_p8 = scmp.lt.u32.totalorder %s2187_s21, %s2277_s24 }
 0x4de   : > { %p1757_p13 = scmp.lt.u32.totalorder %s1755_s13, %s1751_s22  ;;  %p1759_p10 = scmp.lt.u32.totalorder %s1751_s22, %s2187_s21 }
 0x4df   : > { %p1753_p0 = pnand %p1752_p9, %p2046_p5 }
 0x4e0   : > { %p1758_p6 = por %p1757_p13, %p1756_p8 }
 0x4e1   : > { %p1754_p11 = pneg %p1753_p0 }
 0x4e2   : > { %p1760_p3 = por %p1759_p10, %p1758_p6 }
 0x4e4   : > { %p1761_p7 = pnand %p1760_p3, %p1754_p11 }
 0x4e6   : > { %1764 = shalt.err (!%p1761_p7)
}
 0x4e7   : > { %s1823_s15 = smov 128   ;;  %s1824_s4 = smov 8  }
 0x4e8   : > { %1466 = dma.vmem_to_hbm [thread:$0]  (%p2046_p5), %s2182_s8, 256, %s2187_s21, %s1240_s25, %s1823_s15, %s1823_s15, %s1824_s4  }
 0x4e9 PF: > { %s2278_s29 = sld [smem:[#allocation15_spill]]  ;;  %s2279_s12 = sld [smem:[#allocation16_spill]] }
 0x4ea   : > { %p2281_p1 = scmp.ge.s32.totalorder %s1811_s28, 2 }
 0x4ef   : > { %s1268_s19 = sand.u32 1, %s2278_s29   ;;  %p2280_p12 = scmp.ne.s32.totalorder %s2279_s12, 0 }
 0x4f0   : > { %s1269_s22 = scalar_lea.sflag [#allocation4], %s1268_s19 }
 0x4f1   : > { %p1483_p2 = pnand %p2281_p1, %p2280_p12 }
 0x4f3   : > { %1794 = dma.done.wait (!%p1483_p2), %s1269_s22, 256  }
 0x4f4   : > { %1796 = vsyncadd (!%p1483_p2), %s1269_s22, 4294967040  ;;  %p28_p4 = scmp.ge.s32.totalorder %s2032_s9, 4   ;;  %s2282_s25 = smov %s1803_s26 }
 0x4f5   : > { %s2283_s26 = smov %s1807_s27  ;;  %s2284_s27 = smov %s2042_s17 }
 0x4f6   : > { %s2285_s28 = smov %s2032_s9  ;;  %30 = sbr.rel (!%p28_p4) target bundleno = 13 (0xd), region = 129 }
 0x4fd   :  { %1274 = vsyncpa [#allocation3], 1 }
 0x4fe   :  { %1276 = vsyncpa [#allocation3 + $0x1], 1 }
 0x4ff   :  { %1277 = vsyncpa [#allocation6], 1 }
 0x500   :  { %1278 = vsyncpa [#allocation9], 1 }
 0x501   :  { %1279 = vsyncpa [#allocation4], 1 }
 0x502   :  { %1281 = vsyncpa [#allocation4 + $0x1], 1 }

</bundles_post_ra>
